<compile_context>
chip_gen: v7x
topology: tpu7x:2x2x1
jax: 0.10.0
libtpu: 0.0.40
codegen_flags: <defaults>
</compile_context>

<pallas_src>
import jax
import jax.numpy as jnp
from jax.experimental import pallas as pl
from jax.experimental.pallas import tpu as pltpu


# ----------------------------------------------------------------------------
# Kernel: out = sum_i op_i @ w_i + bias   (single collapsed affine map)
# ----------------------------------------------------------------------------
def _affine_kernel(*refs):
    """refs = (op_0, ..., op_{n-1}, w_0, ..., w_{n-1}, bias, out)."""
    n = (len(refs) - 2) // 2
    op_refs = refs[:n]
    w_refs = refs[n:2 * n]
    bias_ref = refs[2 * n]
    out_ref = refs[2 * n + 1]

    acc = jnp.dot(op_refs[0][...], w_refs[0][...],
                  preferred_element_type=jnp.float32)
    for op, w in zip(op_refs[1:], w_refs[1:]):
        acc = acc + jnp.dot(op[...], w[...], preferred_element_type=jnp.float32)
    out_ref[...] = (acc + bias_ref[...]).astype(out_ref.dtype)


# ----------------------------------------------------------------------------
# Tiling / wrapper helpers
# ----------------------------------------------------------------------------
def _round_up(v, m):
    return -(-v // m) * m


def _select_tile(batch, cap, *, min_tile=1024):
    """Pick (tile_rows, padded_batch): tile divides padded_batch, both mult of 8."""
    b8 = _round_up(max(batch, 1), 8)
    cap = max(8, (cap // 8) * 8)
    min_tile = min(min_tile, cap)
    if b8 <= cap:
        # Fits in one tile; split in two for the v7x megacore when big enough
        # that the ~0.35 us per-step overhead stays negligible.
        if b8 % 16 == 0 and b8 // 2 >= min_tile:
            return b8 // 2, b8
        return b8, b8
    # Largest multiple-of-8 divisor of b8 that fits the cap -> zero padding.
    for tb in range(cap, min_tile - 1, -8):
        if b8 % tb == 0:
            return tb, b8
    # Pathological batch (e.g. 8 * large prime): pad to a multiple of the cap
    # rather than crawling the grid with tiny tiles.
    return cap, _round_up(b8, cap)


def _affine_pallas(operands, weights, bias, *, block_rows=4096,
                   min_pallas_rows=4096):
    """out[b, :] = sum_i operands[i][b, :] @ weights[i] + bias  via Pallas.

    operands: list of [B, d_i] f32; weights: list of [d_i, out_dim]; bias: [out_dim].
    """
    batch = operands[0].shape[0]
    out_dim = weights[0].shape[1]
    operands = [jnp.asarray(o, jnp.float32) for o in operands]
    weights = [jnp.asarray(w, jnp.float32) for w in weights]
    bias = jnp.asarray(bias, jnp.float32).reshape(1, out_dim)

    # Tiny batches: pallas_call fixed cost (grid setup, pipeline priming)
    # exceeds the actual work; plain XLA is strictly faster there.
    if batch < min_pallas_rows:
        acc = operands[0] @ weights[0]
        for o, w in zip(operands[1:], weights[1:]):
            acc = acc + o @ w
        return acc + bias

    tb, b_pad = _select_tile(batch, block_rows)
    if b_pad != batch:
        operands = [jnp.pad(o, ((0, b_pad - batch), (0, 0))) for o in operands]

    in_specs = (
        [pl.BlockSpec((tb, o.shape[1]), lambda i: (i, 0)) for o in operands]
        # Weights / bias: constant index_map -> VMEM-resident across steps.
        + [pl.BlockSpec(w.shape, lambda i: (0, 0)) for w in weights]
        + [pl.BlockSpec((1, out_dim), lambda i: (0, 0))]
    )

    # Advisory cost so XLA can schedule neighbours around the custom call.
    in_dim = sum(o.shape[1] for o in operands)
    cost = pl.CostEstimate(
        flops=2 * b_pad * in_dim * out_dim,
        transcendentals=0,
        bytes_accessed=4 * (b_pad * (in_dim + out_dim)
                            + in_dim * out_dim + out_dim),
    )

    out = pl.pallas_call(
        _affine_kernel,
        out_shape=jax.ShapeDtypeStruct((b_pad, out_dim), jnp.float32),
        grid=(b_pad // tb,),
        in_specs=in_specs,
        out_specs=pl.BlockSpec((tb, out_dim), lambda i: (i, 0)),
        compiler_params=pltpu.CompilerParams(
            dimension_semantics=("parallel",),
            vmem_limit_bytes=32 * 1024 * 1024,
        ),
        cost_estimate=cost,
    )(*operands, *weights, bias)

    if b_pad != batch:
        out = out[:batch]
    return out


# ----------------------------------------------------------------------------
# PhiModel-facing API
# ----------------------------------------------------------------------------
def collapse_linear_chain(weights, biases):
    """Fold PhiModel's activation-free Linear chain into one affine map.

    weights[i] is stored [in_i, out_i] (transpose of PyTorch's [out, in]).
    Valid only because fc_inter contains bare nn.Linear layers (no activations,
    dropout inactive in eval mode).  Done once at weight-load time with HIGHEST
    precision so the fold matches the fp32 layer-by-layer chain.
    """
    hi = jax.lax.Precision.HIGHEST
    Wc = jnp.asarray(weights[0], jnp.float32)
    bc = jnp.asarray(biases[0], jnp.float32).reshape(1, -1)
    for W, b in zip(weights[1:], biases[1:]):
        W = jnp.asarray(W, jnp.float32)
        b = jnp.asarray(b, jnp.float32).reshape(1, -1)
        Wc = jnp.dot(Wc, W, precision=hi)
        bc = jnp.dot(bc, W, precision=hi) + b
    return Wc, bc


def phi_forward(x, beta, Wc, bc, *, block_rows=4096, min_pallas_rows=4096):
    """PhiModel.forward: fc_inter(concat([x, beta], 1)) == [x|beta] @ Wc + bc.

    The collapsed weight is split row-wise so the kernel never concatenates
    along lanes:  out = x @ Wc[:xd] + beta @ Wc[xd:] + bc.
    """
    x_dim = x.shape[1]
    beta_dim = beta.shape[1]
    assert Wc.shape[0] == x_dim + beta_dim, "collapsed weight / input mismatch"
    return _affine_pallas([x, beta], [Wc[:x_dim, :], Wc[x_dim:, :]], bc,
                          block_rows=block_rows,
                          min_pallas_rows=min_pallas_rows)


def phi_forward_fused(xb, Wc, bc, *, block_rows=4096, min_pallas_rows=4096):
    """Same forward for producers that already hold the fused [B, 20] operand
    (single input DMA stream, single MXU push per tile)."""
    assert Wc.shape[0] == xb.shape[1], "collapsed weight / input mismatch"
    return _affine_pallas([xb], [Wc], bc,
                          block_rows=block_rows,
                          min_pallas_rows=min_pallas_rows)


# ----------------------------------------------------------------------------
# Demo / self-test
# ----------------------------------------------------------------------------
if __name__ == "__main__":
    # Shapes implied by the module: prev = 20 input features (x ++ beta);
    # layers = [32, 10] -> Linear(20, 32) -> Linear(32, 10), no activations.
    # TODO(synk): training-mode nn.Dropout is not modelled; this is the eval
    # forward (dropout == identity), matching PhiModel inference.
    X_DIM, BETA_DIM, H, OUT = 10, 10, 32, 10

    key = jax.random.PRNGKey(0)
    kx, kb, kw1, kb1, kw2, kb2, kx2, kbb2 = jax.random.split(key, 8)

    # PyTorch Linear weight is [out, in]; stored transposed [in, out] here so
    # the math is y = x @ W + b.
    w1 = jax.random.normal(kw1, (X_DIM + BETA_DIM, H), dtype=jnp.float32) * 0.1
    b1 = jax.random.normal(kb1, (H,), dtype=jnp.float32) * 0.1
    w2 = jax.random.normal(kw2, (H, OUT), dtype=jnp.float32) * 0.1
    b2 = jax.random.normal(kb2, (OUT,), dtype=jnp.float32) * 0.1

    # Collapse the activation-free chain once, at weight-load time.
    Wc, bc = collapse_linear_chain([w1, w2], [b1, b2])

    def reference(xv, bv):
        xbv = jnp.concatenate([xv, bv], axis=1)
        return (xbv @ w1 + b1) @ w2 + b2

    # --- small batch (module-scale demo); force the Pallas path -------------
    B = 8
    x = jax.random.normal(kx, (B, X_DIM), dtype=jnp.float32)
    beta = jax.random.normal(kb, (B, BETA_DIM), dtype=jnp.float32)

    out = jax.block_until_ready(phi_forward(x, beta, Wc, bc, min_pallas_rows=0))
    ref = reference(x, beta)
    assert out.shape == (B, OUT)
    assert jnp.allclose(out, ref, atol=2e-4, rtol=2e-4), "split-path mismatch"

    out_fused = jax.block_until_ready(
        phi_forward_fused(jnp.concatenate([x, beta], axis=1), Wc, bc,
                          min_pallas_rows=0))
    assert jnp.allclose(out_fused, ref, atol=2e-4, rtol=2e-4), "fused-path mismatch"

    # --- larger batch: exercises the multi-step grid / megacore tiling ------
    B2 = 4096
    x2 = jax.random.normal(kx2, (B2, X_DIM), dtype=jnp.float32)
    beta2 = jax.random.normal(kbb2, (B2, BETA_DIM), dtype=jnp.float32)
    out2 = jax.block_until_ready(phi_forward(x2, beta2, Wc, bc))
    assert jnp.allclose(out2, reference(x2, beta2), atol=2e-4, rtol=2e-4), \
        "large-batch mismatch"

    print("KERNEL_OK")
</pallas_src>

<mosaic_0001>
module attributes {stable_mosaic.version = 11 : i64} {
  func.func @_affine_kernel(%arg0: i32, %arg1: memref<8x10xf32, #tpu.memory_space<vmem>>, %arg2: memref<8x10xf32, #tpu.memory_space<vmem>>, %arg3: memref<10x10xf32, #tpu.memory_space<vmem>>, %arg4: memref<10x10xf32, #tpu.memory_space<vmem>>, %arg5: memref<1x10xf32, #tpu.memory_space<vmem>>, %arg6: memref<8x10xf32, #tpu.memory_space<vmem>>) attributes {dimension_semantics = [#tpu.dimension_semantics<parallel>], iteration_bounds = array<i64: 1>, scalar_prefetch = 0 : i64, scratch_operands = 0 : i64, tpu.core_type = #tpu.core_type<tc>, window_params = [{transform_indices = @transform_0, window_bounds = array<i64: 8, 10>}, {transform_indices = @transform_1, window_bounds = array<i64: 8, 10>}, {pipeline_mode = #tpu.pipeline_mode<synchronous>, transform_indices = @transform_2, window_bounds = array<i64: 10, 10>}, {pipeline_mode = #tpu.pipeline_mode<synchronous>, transform_indices = @transform_3, window_bounds = array<i64: 10, 10>}, {pipeline_mode = #tpu.pipeline_mode<synchronous>, transform_indices = @transform_4, window_bounds = array<i64: 1, 10>}, {transform_indices = @transform_5, window_bounds = array<i64: 8, 10>}]} {
    %c0 = arith.constant 0 : index
    %c0_0 = arith.constant 0 : index
    %0 = vector.load %arg1[%c0, %c0_0] : memref<8x10xf32, #tpu.memory_space<vmem>>, vector<8x10xf32>
    %c0_1 = arith.constant 0 : index
    %c0_2 = arith.constant 0 : index
    %1 = vector.load %arg3[%c0_1, %c0_2] : memref<10x10xf32, #tpu.memory_space<vmem>>, vector<10x10xf32>
    %cst = arith.constant dense<0.000000e+00> : vector<8x10xf32>
    %2 = tpu.matmul %0, %1, %cst {dimension_numbers = #tpu.dot_dimension_numbers<[1], [0], [0], [1], [0, 0, 1, 1], [], []>} : vector<8x10xf32>, vector<10x10xf32>, vector<8x10xf32> -> vector<8x10xf32>
    %c0_3 = arith.constant 0 : index
    %c0_4 = arith.constant 0 : index
    %3 = vector.load %arg2[%c0_3, %c0_4] : memref<8x10xf32, #tpu.memory_space<vmem>>, vector<8x10xf32>
    %c0_5 = arith.constant 0 : index
    %c0_6 = arith.constant 0 : index
    %4 = vector.load %arg4[%c0_5, %c0_6] : memref<10x10xf32, #tpu.memory_space<vmem>>, vector<10x10xf32>
    %cst_7 = arith.constant dense<0.000000e+00> : vector<8x10xf32>
    %5 = tpu.matmul %3, %4, %cst_7 {dimension_numbers = #tpu.dot_dimension_numbers<[1], [0], [0], [1], [0, 0, 1, 1], [], []>} : vector<8x10xf32>, vector<10x10xf32>, vector<8x10xf32> -> vector<8x10xf32>
    %6 = arith.addf %2, %5 : vector<8x10xf32>
    %c0_8 = arith.constant 0 : index
    %c0_9 = arith.constant 0 : index
    %7 = vector.load %arg5[%c0_8, %c0_9] : memref<1x10xf32, #tpu.memory_space<vmem>>, vector<1x10xf32>
    %8 = vector.broadcast %7 : vector<1x10xf32> to vector<8x10xf32>
    %9 = arith.addf %6, %8 : vector<8x10xf32>
    %c0_10 = arith.constant 0 : index
    %c0_11 = arith.constant 0 : index
    %10 = vector.load %arg6[%c0_10, %c0_11] : memref<8x10xf32, #tpu.memory_space<vmem>>, vector<8x10xf32>
    tpu.vector_store %arg6[%c0_10, %c0_11], %9 {strides = array<i32>} : memref<8x10xf32, #tpu.memory_space<vmem>>, vector<8x10xf32>,
    return
  }
  func.func @transform_0(%arg0: i32) -> (i32, i32) {
    %c0_i32 = arith.constant 0 : i32
    %c0_i32_0 = arith.constant 0 : i32
    return %arg0, %c0_i32 : i32, i32
  }
  func.func @transform_1(%arg0: i32) -> (i32, i32) {
    %c0_i32 = arith.constant 0 : i32
    %c0_i32_0 = arith.constant 0 : i32
    return %arg0, %c0_i32 : i32, i32
  }
  func.func @transform_2(%arg0: i32) -> (i32, i32) {
    %c0_i32 = arith.constant 0 : i32
    %c0_i32_0 = arith.constant 0 : i32
    %c0_i32_1 = arith.constant 0 : i32
    return %c0_i32, %c0_i32_0 : i32, i32
  }
  func.func @transform_3(%arg0: i32) -> (i32, i32) {
    %c0_i32 = arith.constant 0 : i32
    %c0_i32_0 = arith.constant 0 : i32
    %c0_i32_1 = arith.constant 0 : i32
    return %c0_i32, %c0_i32_0 : i32, i32
  }
  func.func @transform_4(%arg0: i32) -> (i32, i32) {
    %c0_i32 = arith.constant 0 : i32
    %c0_i32_0 = arith.constant 0 : i32
    %c0_i32_1 = arith.constant 0 : i32
    return %c0_i32, %c0_i32_0 : i32, i32
  }
  func.func @transform_5(%arg0: i32) -> (i32, i32) {
    %c0_i32 = arith.constant 0 : i32
    %c0_i32_0 = arith.constant 0 : i32
    return %arg0, %c0_i32 : i32, i32
  }
}

</mosaic_0001>

<bundles_post_ra>
// kernel: tpu_custom_call.1
= control target key start
LH: loop header
LB: loop body
LE: loop exit
PB: predicated region body
PF: predicated region fallthrough
CT: control target
= control target key end

     0   :  { %10 = vsyncpa [#allocation3], 0  ;;  %s524_s0 = inlined_call_operand.hbm [shape: f32[8,10], index: 0, kind: input, shape index: {}]   ;;  %s525_s1 = inlined_call_operand.hbm [shape: f32[8,10], index: 1, kind: input, shape index: {}]   ;;  %s526_s2 = inlined_call_operand.hbm [shape: f32[10,10], index: 2, kind: input, shape index: {}]   ;;  %s527_s3 = inlined_call_operand.hbm [shape: f32[10,10], index: 3, kind: input, shape index: {}]   ;;  %s528_s4 = inlined_call_operand.vmem [shape: f32[1,10], index: 4, kind: input, shape index: {}]   ;;  %s529_s5 = inlined_call_operand.hbm [shape: f32[8,10], index: 5, kind: output, shape index: {}]  }
   0x1   :  { %11 = vsyncpa [#allocation6], 0 }
   0x2   :  { %12 = vsyncpa [#allocation9], 0 }
   0x3   :  { %13 = vsyncpa [#allocation4], 0  ;;  %s420_s18 = smov [#allocation5]   ;;  %s421_s20 = smov [#allocation2]  }
   0x4   :  { %s30_s19 = sshll.u32 %s420_s18, 4  ;;  %s20_s21 = sshll.u32 %s421_s20, 4  ;;  %s31_s19 = int_to_ptr.vmem [resolvable:$true] %s30_s19  ;;  %s21_s21 = int_to_ptr.vmem [resolvable:$true] %s20_s21 }
   0x5   :  { %s302_s24 = scalar_lea.hbm %s525_s1, 128 }
   0x6   :  { %p303_p0 = scmp.ne.s32.totalorder %s525_s1, %s302_s24  ;;  %p306_p1 = scmp.lt.u32.totalorder %s302_s24, %s525_s1 }
   0x8   :  { %p308_p2 = pnand %p306_p1, %p303_p0 }
   0xa   :  { %311 = shalt.err (!%p308_p2)
}
   0xb   :  { %s312_s29 = scalar_lea.vmem %s31_s19, 128  ;;  %p317_p4 = scmp.lt.s32.totalorder %s31_s19, %s31_s19 }
   0xc   :  { %p313_p3 = scmp.ne.s32.totalorder %s31_s19, %s312_s29  ;;  %p318_p5 = scmp.lt.s32.totalorder %s312_s29, %s312_s29 }
   0xe   :  { %p319_p6 = por %p318_p5, %p317_p4 }
  0x10   :  { %p320_p7 = pnand %p319_p6, %p313_p3 }
  0x12   :  { %323 = shalt.err (!%p320_p7)
}
  0x13   :  { %33 = dma.hbm_to_vmem [thread:$0]  %s525_s1, 128, %s31_s19, [#allocation6]  }
  0x14   :  { %s324_s9 = scalar_lea.hbm %s524_s0, 128 }
  0x15   :  { %p325_p8 = scmp.ne.s32.totalorder %s524_s0, %s324_s9  ;;  %p328_p9 = scmp.lt.u32.totalorder %s324_s9, %s524_s0 }
  0x17   :  { %p330_p10 = pnand %p328_p9, %p325_p8 }
  0x19   :  { %333 = shalt.err (!%p330_p10)
}
  0x1a   :  { %s334_s14 = scalar_lea.vmem %s21_s21, 128  ;;  %p339_p12 = scmp.lt.s32.totalorder %s21_s21, %s21_s21 }
  0x1b   :  { %p335_p11 = scmp.ne.s32.totalorder %s21_s21, %s334_s14  ;;  %p340_p13 = scmp.lt.s32.totalorder %s334_s14, %s334_s14 }
  0x1d   :  { %p341_p0 = por %p340_p13, %p339_p12 }
  0x1f   :  { %p342_p1 = pnand %p341_p0, %p335_p11 }
  0x21   :  { %345 = shalt.err (!%p342_p1)
}
  0x22   :  { %23 = dma.hbm_to_vmem [thread:$0]  %s524_s0, 128, %s21_s21, [#allocation3]  }
  0x23   :  { %s422_s16 = smov [#allocation7]   ;;  %s346_s20 = scalar_lea.hbm %s526_s2, 256 }
  0x24   :  { %s39_s17 = sshll.u32 %s422_s16, 4  ;;  %p347_p2 = scmp.ne.s32.totalorder %s526_s2, %s346_s20  ;;  %s40_s17 = int_to_ptr.vmem [resolvable:$true] %s39_s17 }
  0x25   :  { %p350_p3 = scmp.lt.u32.totalorder %s346_s20, %s526_s2 }
  0x27   :  { %p352_p4 = pnand %p350_p3, %p347_p2 }
  0x29   :  { %355 = shalt.err (!%p352_p4)
}
  0x2a   :  { %s356_s26 = scalar_lea.vmem %s40_s17, 256  ;;  %p361_p6 = scmp.lt.s32.totalorder %s40_s17, %s40_s17 }
  0x2b   :  { %p357_p5 = scmp.ne.s32.totalorder %s40_s17, %s356_s26  ;;  %p362_p7 = scmp.lt.s32.totalorder %s356_s26, %s356_s26 }
  0x2d   :  { %p363_p8 = por %p362_p7, %p361_p6 }
  0x2f   :  { %p364_p9 = pnand %p363_p8, %p357_p5 }
  0x31   :  { %367 = shalt.err (!%p364_p9)
}
  0x32   :  { %s423_s0 = smov 128   ;;  %s424_s21 = smov 8  }
  0x33   :  { %45 = dma.hbm_to_vmem [thread:$0]  %s526_s2, 256, %s40_s17, [#allocation6], %s423_s0, %s423_s0, %s424_s21  }
  0x34   :  { %s425_s29 = smov [#allocation8]   ;;  %s368_s8 = scalar_lea.hbm %s527_s3, 256 }
  0x35   :  { %s51_s30 = sshll.u32 %s425_s29, 4  ;;  %p369_p10 = scmp.ne.s32.totalorder %s527_s3, %s368_s8  ;;  %s52_s30 = int_to_ptr.vmem [resolvable:$true] %s51_s30 }
  0x36   :  { %p372_p11 = scmp.lt.u32.totalorder %s368_s8, %s527_s3 }
  0x38   :  { %p374_p12 = pnand %p372_p11, %p369_p10 }
  0x3a   :  { %377 = shalt.err (!%p374_p12)
}
  0x3b   :  { %s378_s13 = scalar_lea.vmem %s52_s30, 256  ;;  %p383_p0 = scmp.lt.s32.totalorder %s52_s30, %s52_s30 }
  0x3c   :  { %p379_p13 = scmp.ne.s32.totalorder %s52_s30, %s378_s13  ;;  %p384_p1 = scmp.lt.s32.totalorder %s378_s13, %s378_s13 }
  0x3e   :  { %p385_p2 = por %p384_p1, %p383_p0 }
  0x40   :  { %p386_p3 = pnand %p385_p2, %p379_p13 }
  0x42   :  { %389 = shalt.err (!%p386_p3)
}
  0x43   :  { %57 = dma.hbm_to_vmem [thread:$0]  %s527_s3, 256, %s52_s30, [#allocation9], %s423_s0, %s423_s0, %s424_s21  }
  0x44   :  { %412 = dma.done.wait [#allocation3], 128  }
  0x45   :  { %413 = vsyncadd [#allocation3], 4294967168 }
  0x46   :  { %414 = dma.done.wait [#allocation6], 384  }
  0x47   :  { %415 = vsyncadd [#allocation6], 4294966912 }
  0x48   :  { %416 = dma.done.wait [#allocation9], 256  }
  0x49   :  { %417 = vsyncadd [#allocation9], 4294967040  ;;  %v426_v0 = vmov 0.0|0.0   ;;  %vm427_vm0 = vmmov 0   ;;  %v428_v1 = vmov 0.0   ;;  %vm82_vm1 = vcmask 1041408  }
  0x4a   :  { %283 = vmatprep.subr.bf16.mxu0 %v426_v0  ;;  %287 = vmatprep.subr.bf16.mxu1 %v426_v0  ;;  %vm429_vm2 = vmmov 1   ;;  %v76_v2 = vld [vmem:[#allocation8] sm:$0xff]  ;;  %v77_v3 = vld [vmem:[#allocation8 + $0x8] sm:$0x3]  ;;  %v73_v4 = vld [vmem:[#allocation7] sm:$0xff]  ;;  %vm78_vm4 = vcmask 80896  }
  0x4b   :  { %273 = vmatprep.mubr.msk.f32.mxu0 %vm427_vm0, %v428_v1  ;;  %280 = vmatprep.mubr.msk.f32.mxu1 %vm427_vm0, %v428_v1  ;;  %vm285_vm3 = vmpackc.low %vm82_vm1, %vm429_vm2  ;;  %v284_v5 = vpack.c.bf16 %v77_v3, %v76_v2  ;;  %v74_v6 = vld [vmem:[#allocation7 + $0x8] sm:$0x3]  ;;  %v75_v8 = vld [vmem:[#allocation5] sm:$0xff]  ;;  %s430_s15 = smov [#allocation10]  }
  0x4c   :  { %v288_v7 = vpack.c.bf16 %v74_v6, %v73_v4  ;;  %v72_v9 = vld [vmem:[#allocation2] sm:$0xff]  ;;  %s247_s16 = sshll.u32 %s430_s15, 4  ;;  %s248_s16 = int_to_ptr.vmem [resolvable:$true] %s247_s16 }
  0x4d   :  { %286 = vmatpush3.bf16.msk.msra.mxu0 %vm285_vm3, %v284_v5  ;;  %v262_v12 = vld [vmem:[%s528_s4] ss:$0 sm:$0xff]  ;;  %s390_s17 = scalar_lea.vmem %s248_s16, 128  ;;  %p395_p5 = scmp.lt.s32.totalorder %s248_s16, %s248_s16 }
  0x4e   :  { %290 = vmatpush3.bf16.msk.msra.mxu1 %vm285_vm3, %v288_v7  ;;  %p391_p4 = scmp.ne.s32.totalorder %s248_s16, %s390_s17  ;;  %p396_p6 = scmp.lt.s32.totalorder %s390_s17, %s390_s17 }
  0x50   :  { %274 = vmatmul.mubr.msk.f32.vlgmr.msra.gmra.mrb[0].mxu0 %vm78_vm4, %v75_v8  ;;  %p397_p7 = por %p396_p6, %p395_p5 }
  0x51   :  { %281 = vmatmul.mubr.msk.f32.vlgmr.msra.gmra.mrb[0].mxu1 %vm78_vm4, %v72_v9 }
  0x52   :  { %p398_p8 = pnand %p397_p7, %p391_p4 }
 0x123   :  { %v152_v10 = vpop.f32.mrb[0].mxu0 }
 0x124   :  { %v228_v11 = vpop.f32.mrb[0].mxu1  ;;  %v275_v13 = vpop.f32.mrb[1].mxu0 }
 0x125   :  { %v229_v14 = vadd.f32 %v228_v11, %v152_v10  ;;  %v282_v15 = vpop.f32.mrb[1].mxu1 }
 0x127   :  { %v239_v16 = vadd.f32 %v262_v12, %v229_v14 }
 0x129   :  { %240 = vst.msk [vmem:[#allocation10] sm:$0xff] %vm78_vm4, %v239_v16 }
 0x12a   :  { %401 = shalt.err (!%p398_p8)
}
 0x12b   :  { %s402_s20 = scalar_lea.hbm %s529_s5, 128 }
 0x12c   :  { %p403_p9 = scmp.ne.s32.totalorder %s529_s5, %s402_s20  ;;  %p406_p10 = scmp.lt.u32.totalorder %s402_s20, %s529_s5 }
 0x12e   :  { %p408_p11 = pnand %p406_p10, %p403_p9 }
 0x130   :  { %411 = shalt.err (!%p408_p11)
}
 0x131   :  { %250 = dma.vmem_to_hbm [thread:$0]  %s248_s16, 128, %s529_s5, [#allocation4]  }
 0x132   :  { %418 = dma.done.wait [#allocation4], 128  }
 0x133   :  { %419 = vsyncadd [#allocation4], 4294967168 }
 0x134   :  { %254 = vsyncpa [#allocation3], 1 }
 0x135   :  { %255 = vsyncpa [#allocation6], 1 }
 0x136   :  { %256 = vsyncpa [#allocation9], 1 }
 0x137   :  { %257 = vsyncpa [#allocation4], 1 }

</bundles_post_ra>
